<compile_context>
chip_gen: v5e
topology: v5e:2x2
jax: 0.10.0
libtpu: 0.0.40
codegen_flags: <defaults>
</compile_context>

<pallas_src>
import functools

import jax
import jax.numpy as jnp
from jax.experimental import pallas as pl
from jax.experimental.pallas import tpu as pltpu

_EPS = 1e-6
_TR_CAP = 4096  # rows of 128 lanes per block: 4096*128*4B = 2 MiB f32 per input block


def _dice_partials_kernel(p_ref, t_ref, out_ref):
    # p_ref/t_ref: (tr, 128) native-dtype feature tile of one sample.
    # out_ref:     (3, 8, 128) f32, resident across the reduction (j) axis:
    #              row 0 = intersection partials, 1 = sum(preds), 2 = sum(true).
    j = pl.program_id(1)

    @pl.when(j == 0)
    def _init():
        out_ref[...] = jnp.zeros_like(out_ref)

    p = p_ref[...].astype(jnp.float32)
    t = t_ref[...].astype(jnp.float32)

    r = p.shape[0] // 8  # static (block shape)
    # Fold over the leading (non-sublane/non-lane) axis: pure elementwise VPU
    # adds, no cross-lane XLU work in the hot path.
    out_ref[0] += jnp.sum((p * t).reshape(r, 8, 128), axis=0)
    out_ref[1] += jnp.sum(p.reshape(r, 8, 128), axis=0)
    out_ref[2] += jnp.sum(t.reshape(r, 8, 128), axis=0)


@functools.partial(jax.jit, static_argnames=("reduction",))
def dice_loss(preds, true, reduction="mean"):
    """Soft Dice loss.  preds/true: NCHW (or N-anything) arrays.  Scalar loss."""
    n = preds.shape[0]
    d = 1
    for s in preds.shape[1:]:
        d *= s

    # Keep native dtypes (bf16 / f32 / bool mask) — cast to f32 inside the kernel.
    p2 = preds.reshape(n, d)
    t2 = true.reshape(n, d)

    # Sublane/lane-dense tiling: features -> (R_pad, 128) rows, block (tr, 128).
    r_rows = -(-d // 128)                      # cdiv(d, 128)
    j_blocks = max(1, -(-r_rows // _TR_CAP))   # number of reduction steps
    tr = ((-(-r_rows // j_blocks) + 7) // 8) * 8
    r_pad = j_blocks * tr
    d_pad = r_pad * 128

    if d_pad != d:
        # Zero padding is neutral for all three sums.
        p2 = jnp.pad(p2, ((0, 0), (0, d_pad - d)))
        t2 = jnp.pad(t2, ((0, 0), (0, d_pad - d)))

    p3 = p2.reshape(n, r_pad, 128)
    t3 = t2.reshape(n, r_pad, 128)

    partials = pl.pallas_call(
        _dice_partials_kernel,
        out_shape=jax.ShapeDtypeStruct((n, 3, 8, 128), jnp.float32),
        grid_spec=pltpu.PrefetchScalarGridSpec(
            num_scalar_prefetch=0,
            grid=(n, j_blocks),  # (batch: parallel, feature rows: reduction)
            in_specs=[
                pl.BlockSpec((None, tr, 128), lambda i, j: (i, j, 0)),
                pl.BlockSpec((None, tr, 128), lambda i, j: (i, j, 0)),
            ],
            out_specs=pl.BlockSpec((None, 3, 8, 128), lambda i, j: (i, 0, 0, 0)),
        ),
        compiler_params=pltpu.CompilerParams(
            dimension_semantics=("parallel", "arbitrary"),
            vmem_limit_bytes=32 * 1024 * 1024,
        ),
    )(p3, t3)

    # Tiny finalize in JAX: cross-lane/sublane reduce of per-sample partials.
    sums = jnp.sum(partials, axis=(2, 3))          # (n, 3)
    inter, sp, st = sums[:, 0], sums[:, 1], sums[:, 2]
    dice = (2.0 * inter + _EPS) / (sp + st + _EPS)  # (n,)

    if reduction == "mean":
        dice_red = jnp.mean(dice)
    elif reduction == "sum":
        dice_red = jnp.sum(dice)
    elif reduction == "none":
        dice_red = dice
    else:
        # TODO(synk): DiceScoreSoft is not shown in the source snippet; only the
        # standard mean/sum/none reductions are implemented here.
        raise NotImplementedError(f"unsupported reduction: {reduction}")

    return 1.0 - dice_red


def _dice_loss_ref(preds, true):
    n = preds.shape[0]
    p2 = preds.reshape(n, -1).astype(jnp.float32)
    t2 = true.reshape(n, -1).astype(jnp.float32)
    inter = jnp.sum(p2 * t2, axis=1)
    dice = (2.0 * inter + _EPS) / (jnp.sum(p2, axis=1) + jnp.sum(t2, axis=1) + _EPS)
    return 1.0 - jnp.mean(dice)


if __name__ == "__main__":
    key = jax.random.PRNGKey(0)
    k1, k2 = jax.random.split(key)
    # NCHW, small shapes: batch=2, channels=4, spatial=16x16
    preds = jax.nn.sigmoid(jax.random.normal(k1, (2, 4, 16, 16), dtype=jnp.float32))
    true = (jax.random.uniform(k2, (2, 4, 16, 16)) > 0.5).astype(jnp.float32)

    loss = dice_loss(preds, true)
    loss = jax.block_until_ready(loss)

    ref = _dice_loss_ref(preds, true)
    assert jnp.allclose(loss, ref, atol=1e-5, rtol=1e-5), (loss, ref)
    print("KERNEL_OK")
</pallas_src>

<mosaic_0001>
module attributes {stable_mosaic.version = 11 : i64} {
  func.func @_dice_partials_kernel(%arg0: i32, %arg1: i32, %arg2: memref<1x8x128xf32, #tpu.memory_space<vmem>>, %arg3: memref<1x8x128xf32, #tpu.memory_space<vmem>>, %arg4: memref<1x3x8x128xf32, #tpu.memory_space<vmem>>) attributes {dimension_semantics = [#tpu.dimension_semantics<parallel>, #tpu.dimension_semantics<arbitrary>], iteration_bounds = array<i64: 2, 1>, scalar_prefetch = 0 : i64, scratch_operands = 0 : i64, tpu.core_type = #tpu.core_type<tc>, window_params = [{transform_indices = @transform_0, window_bounds = array<i64: 1, 8, 128>}, {transform_indices = @transform_1, window_bounds = array<i64: 1, 8, 128>}, {transform_indices = @transform_2, window_bounds = array<i64: 1, 3, 8, 128>}]} {
    %c0_i32 = arith.constant 0 : i32
    %0 = arith.cmpi eq, %arg1, %c0_i32 : i32
    %1 = arith.extui %0 : i1 to i32
    %c0_i32_0 = arith.constant 0 : i32
    %2 = arith.cmpi ne, %1, %c0_i32_0 : i32
    scf.if %2 {
      %cst_30 = arith.constant 0.000000e+00 : f32
      %32 = vector.broadcast %cst_30 : f32 to vector<3x8x128xf32>
      %c0_31 = arith.constant 0 : index
      %c0_32 = arith.constant 0 : index
      %c0_33 = arith.constant 0 : index
      %c0_34 = arith.constant 0 : index
      %33 = vector.load %arg4[%c0_31, %c0_32, %c0_33, %c0_34] : memref<1x3x8x128xf32, #tpu.memory_space<vmem>>, vector<1x3x8x128xf32>
      %34 = vector.shape_cast %33 : vector<1x3x8x128xf32> to vector<3x8x128xf32>
      %35 = vector.shape_cast %32 : vector<3x8x128xf32> to vector<1x3x8x128xf32>
      tpu.vector_store %arg4[%c0_31, %c0_32, %c0_33, %c0_34], %35 {strides = array<i32>} : memref<1x3x8x128xf32, #tpu.memory_space<vmem>>, vector<1x3x8x128xf32>,
    } else {
    }
    %c0 = arith.constant 0 : index
    %c0_1 = arith.constant 0 : index
    %c0_2 = arith.constant 0 : index
    %3 = vector.load %arg2[%c0, %c0_1, %c0_2] : memref<1x8x128xf32, #tpu.memory_space<vmem>>, vector<1x8x128xf32>
    %4 = vector.shape_cast %3 : vector<1x8x128xf32> to vector<8x128xf32>
    %c0_3 = arith.constant 0 : index
    %c0_4 = arith.constant 0 : index
    %c0_5 = arith.constant 0 : index
    %5 = vector.load %arg3[%c0_3, %c0_4, %c0_5] : memref<1x8x128xf32, #tpu.memory_space<vmem>>, vector<1x8x128xf32>
    %6 = vector.shape_cast %5 : vector<1x8x128xf32> to vector<8x128xf32>
    %c0_6 = arith.constant 0 : index
    %c0_7 = arith.constant 0 : index
    %c0_8 = arith.constant 0 : index
    %c0_9 = arith.constant 0 : index
    %7 = vector.load %arg4[%c0_6, %c0_7, %c0_8, %c0_9] : memref<1x3x8x128xf32, #tpu.memory_space<vmem>>, vector<1x1x8x128xf32>
    %8 = vector.shape_cast %7 : vector<1x1x8x128xf32> to vector<8x128xf32>
    %9 = arith.mulf %4, %6 : vector<8x128xf32>
    %10 = vector.shape_cast %9 : vector<8x128xf32> to vector<1x8x128xf32>
    %cst = arith.constant dense<0.000000e+00> : vector<8x128xf32>
    %11 = vector.multi_reduction <add>, %10, %cst [0] : vector<1x8x128xf32> to vector<8x128xf32>
    %12 = arith.addf %8, %11 : vector<8x128xf32>
    %c0_10 = arith.constant 0 : index
    %c0_11 = arith.constant 0 : index
    %c0_12 = arith.constant 0 : index
    %c0_13 = arith.constant 0 : index
    %13 = vector.load %arg4[%c0_10, %c0_11, %c0_12, %c0_13] : memref<1x3x8x128xf32, #tpu.memory_space<vmem>>, vector<1x1x8x128xf32>
    %14 = vector.shape_cast %13 : vector<1x1x8x128xf32> to vector<8x128xf32>
    %15 = vector.shape_cast %12 : vector<8x128xf32> to vector<1x1x8x128xf32>
    tpu.vector_store %arg4[%c0_10, %c0_11, %c0_12, %c0_13], %15 {strides = array<i32>} : memref<1x3x8x128xf32, #tpu.memory_space<vmem>>, vector<1x1x8x128xf32>,
    %c0_14 = arith.constant 0 : index
    %c1 = arith.constant 1 : index
    %c0_15 = arith.constant 0 : index
    %c0_16 = arith.constant 0 : index
    %16 = vector.load %arg4[%c0_14, %c1, %c0_15, %c0_16] : memref<1x3x8x128xf32, #tpu.memory_space<vmem>>, vector<1x1x8x128xf32>
    %17 = vector.shape_cast %16 : vector<1x1x8x128xf32> to vector<8x128xf32>
    %18 = vector.shape_cast %4 : vector<8x128xf32> to vector<1x8x128xf32>
    %cst_17 = arith.constant dense<0.000000e+00> : vector<8x128xf32>
    %19 = vector.multi_reduction <add>, %18, %cst_17 [0] : vector<1x8x128xf32> to vector<8x128xf32>
    %20 = arith.addf %17, %19 : vector<8x128xf32>
    %c0_18 = arith.constant 0 : index
    %c1_19 = arith.constant 1 : index
    %c0_20 = arith.constant 0 : index
    %c0_21 = arith.constant 0 : index
    %21 = vector.load %arg4[%c0_18, %c1_19, %c0_20, %c0_21] : memref<1x3x8x128xf32, #tpu.memory_space<vmem>>, vector<1x1x8x128xf32>
    %22 = vector.shape_cast %21 : vector<1x1x8x128xf32> to vector<8x128xf32>
    %23 = vector.shape_cast %20 : vector<8x128xf32> to vector<1x1x8x128xf32>
    tpu.vector_store %arg4[%c0_18, %c1_19, %c0_20, %c0_21], %23 {strides = array<i32>} : memref<1x3x8x128xf32, #tpu.memory_space<vmem>>, vector<1x1x8x128xf32>,
    %c0_22 = arith.constant 0 : index
    %c2 = arith.constant 2 : index
    %c0_23 = arith.constant 0 : index
    %c0_24 = arith.constant 0 : index
    %24 = vector.load %arg4[%c0_22, %c2, %c0_23, %c0_24] : memref<1x3x8x128xf32, #tpu.memory_space<vmem>>, vector<1x1x8x128xf32>
    %25 = vector.shape_cast %24 : vector<1x1x8x128xf32> to vector<8x128xf32>
    %26 = vector.shape_cast %6 : vector<8x128xf32> to vector<1x8x128xf32>
    %cst_25 = arith.constant dense<0.000000e+00> : vector<8x128xf32>
    %27 = vector.multi_reduction <add>, %26, %cst_25 [0] : vector<1x8x128xf32> to vector<8x128xf32>
    %28 = arith.addf %25, %27 : vector<8x128xf32>
    %c0_26 = arith.constant 0 : index
    %c2_27 = arith.constant 2 : index
    %c0_28 = arith.constant 0 : index
    %c0_29 = arith.constant 0 : index
    %29 = vector.load %arg4[%c0_26, %c2_27, %c0_28, %c0_29] : memref<1x3x8x128xf32, #tpu.memory_space<vmem>>, vector<1x1x8x128xf32>
    %30 = vector.shape_cast %29 : vector<1x1x8x128xf32> to vector<8x128xf32>
    %31 = vector.shape_cast %28 : vector<8x128xf32> to vector<1x1x8x128xf32>
    tpu.vector_store %arg4[%c0_26, %c2_27, %c0_28, %c0_29], %31 {strides = array<i32>} : memref<1x3x8x128xf32, #tpu.memory_space<vmem>>, vector<1x1x8x128xf32>,
    return
  }
  func.func @transform_0(%arg0: i32, %arg1: i32) -> (i32, i32, i32) {
    %c0_i32 = arith.constant 0 : i32
    %c0_i32_0 = arith.constant 0 : i32
    return %arg0, %arg1, %c0_i32 : i32, i32, i32
  }
  func.func @transform_1(%arg0: i32, %arg1: i32) -> (i32, i32, i32) {
    %c0_i32 = arith.constant 0 : i32
    %c0_i32_0 = arith.constant 0 : i32
    return %arg0, %arg1, %c0_i32 : i32, i32, i32
  }
  func.func @transform_2(%arg0: i32, %arg1: i32) -> (i32, i32, i32, i32) {
    %c0_i32 = arith.constant 0 : i32
    %c0_i32_0 = arith.constant 0 : i32
    %c0_i32_1 = arith.constant 0 : i32
    %c0_i32_2 = arith.constant 0 : i32
    return %arg0, %c0_i32, %c0_i32_0, %c0_i32_1 : i32, i32, i32, i32
  }
}

</mosaic_0001>

<bundles_post_ra>
// kernel: dice_loss.1
= control target key start
LH: loop header
LB: loop body
LE: loop exit
PB: predicated region body
PF: predicated region fallthrough
CT: control target
= control target key end

     0   :  { %s376_s9 = smov 0   ;;  %s378_s10 = smov 0   ;;  %s400_s0 = inlined_call_operand.vmem [shape: f32[2,8,128], index: 0, kind: input, shape index: {}]   ;;  %s401_s1 = inlined_call_operand.vmem [shape: f32[2,8,128], index: 1, kind: input, shape index: {}]   ;;  %s402_s2 = inlined_call_operand.vmem [shape: f32[2,3,8,128], index: 2, kind: output, shape index: {}]  }
   0x1   :  { %s380_s11 = smov 0  }
   0x2 LB: > { %s24_s12 = sadd.s32 1, %s355_s10  ;;  %p301_p0 = scmp.ge.s32.totalorder %s359_s11, 1  ;;  %s359_s11 = sphi %s380_s11, %s12_s11   ;;  %s355_s10 = sphi %s378_s10, %s404_s10   ;;  %s351_s9 = sphi %s376_s9, %s403_s9  }
   0x3   : > { %p26_p1 = scmp.ge.s32.totalorder %s24_s12, 2  ;;  %p142_p2 = scmp.lt.s32.totalorder %s359_s11, 3 }
   0x5   : > { %s406_s12 = smov (%p26_p1, %s24_s12), 0  ;;  %p143_p3 = pnand %p301_p0, %p142_p2 }
   0x6   : > { %p173_p4 = scmp.lt.s32.totalorder (!%p143_p3), %s351_s9, 1 }
   0x7   : > { %146 = sbr.rel (%p143_p3) target bundleno = 20 (0x14), region = 28 }
   0xc   : > { %s408_s9 = smov (!%p173_p4, %s351_s9), 1 }
   0xd   : > { %s311_s13 = smul.u32 24, %s408_s9  ;;  %s302_s14 = sshll.u32 %s408_s9, 3 }
   0xe   : > { %s179_s17 = scalar_lea.vmem %s400_s0, %s302_s14  ;;  %s186_s20 = scalar_lea.vmem %s401_s1, %s302_s14 }
   0xf   : > { %s191_s23 = scalar_lea.vmem %s402_s2, %s311_s13  ;;  %v199_v0 = vld [vmem:[%s179_s17] sm:$0xff] }
  0x10   : > { %v200_v1 = vld [vmem:[%s186_s20] sm:$0xff]  ;;  %306 = vst [vmem:[%s191_s23 + $0x8] sm:$0xff] %v199_v0 }
  0x11   : > { %v202_v2 = vmul.f32 %v200_v1, %v199_v0  ;;  %308 = vst [vmem:[%s191_s23 + $0x10] sm:$0xff] %v200_v1 }
  0x13   : > { %205 = vst [vmem:[%s191_s23] sm:$0xff] %v202_v2 }
  0x14 PF: > { %s12_s11 = sadd.s32 1, %s359_s11   ;;  %s403_s9 = smov %s355_s10 }
  0x15   : > { %p9_p5 = scmp.ge.s32.totalorder %s12_s11, 4   ;;  %s404_s10 = smov %s406_s12 }
  0x17   :  { %11 = sbr.rel (!%p9_p5) target bundleno = 2 (0x2), region = 67 }

</bundles_post_ra>
